<compile_context>
chip_gen: v5e
topology: v5e:2x2
jax: 0.10.0
libtpu: 0.0.40
codegen_flags: <defaults>
</compile_context>

<pallas_src>
import jax
import jax.numpy as jnp
from jax.experimental import pallas as pl
from jax.experimental.pallas import tpu as pltpu

_NEG = -1e30  # bias padding value so padded bucket lanes vanish in log-softmax


def classifier_kernel(e_ref, wa_ref, ba_ref, vbd_ref, wl_ref, bl_ref, out_ref):
    # e_ref  : [S, B, D]   encoder outputs, seq-first (as produced upstream)
    # wa_ref : [D, G*A]    stacked attention projection weights
    # ba_ref : [1, G*A]    stacked attention projection biases
    # vbd_ref: [G*A, G]    block-diagonal attention scoring vectors
    # wl_ref : [G, D, Kp]  per-goal bucket linear weights (lane-padded with 0)
    # bl_ref : [G, 1, Kp]  per-goal bucket linear biases  (lane-padded with -1e30)
    # out_ref: [G, B, Kp]  log-softmax bucket probs (lane-dense; pad sliced off outside)
    S, B, D = e_ref.shape
    G = vbd_ref.shape[1]

    # Relayout to batch-first inside VMEM (no extra HBM traffic).
    e_bt = jnp.transpose(e_ref[...], (1, 0, 2))                      # [B, S, D]
    e2 = e_bt.reshape(B * S, D)                                      # [B*S, D]

    # All-goal attention projection + scoring: two stacked matmuls.
    energy = jnp.tanh(
        jnp.dot(e2, wa_ref[...], preferred_element_type=jnp.float32)
        + ba_ref[...])                                               # [B*S, G*A]
    scores = jnp.dot(energy, vbd_ref[...],
                     preferred_element_type=jnp.float32)             # [B*S, G]
    s3 = scores.reshape(B, S, G)                                     # [B, S, G]

    # Softmax over the sequence axis (per batch, per goal).
    m = jnp.max(s3, axis=1, keepdims=True)                           # [B, 1, G]
    ex = jnp.exp(s3 - m)
    attn = ex / jnp.sum(ex, axis=1, keepdims=True)                   # [B, S, G]

    # Weighted encoder representation for every goal at once.
    attn_t = jnp.transpose(attn, (0, 2, 1))                          # [B, G, S]
    weighted = jnp.einsum('bgs,bsd->bgd', attn_t, e_bt,
                          preferred_element_type=jnp.float32)        # [B, G, D]
    wg = jnp.transpose(weighted, (1, 0, 2))                          # [G, B, D]

    # Per-goal bucket energies (batched over goals) + log-softmax over buckets.
    energies = jnp.einsum('gbd,gdk->gbk', wg, wl_ref[...],
                          preferred_element_type=jnp.float32) + bl_ref[...]  # [G, B, Kp]
    mx = jnp.max(energies, axis=-1, keepdims=True)
    lse = mx + jnp.log(jnp.sum(jnp.exp(energies - mx), axis=-1, keepdims=True))
    out_ref[...] = energies - lse                                    # one dense store


def classifier_forward(encoder_outputs, params):
    """encoder_outputs: [S, B, D] (torch seq-first). Returns [B, G, K]."""
    wa, ba, v, wl, bl = params
    S, B, D = encoder_outputs.shape
    G, _, A = wa.shape
    K = wl.shape[-1]
    Kp = ((K + 127) // 128) * 128          # lane-dense output width (>= 128)

    # One-time weight packing (tiny tensors, done by XLA outside the kernel).
    wa_s = jnp.transpose(wa, (1, 0, 2)).reshape(D, G * A)            # [D, G*A]
    ba_s = ba[:, 0, :].reshape(1, G * A)                             # [1, G*A]
    v_bd = jnp.einsum('ga,gh->gah', v[:, 0, :],
                      jnp.eye(G, dtype=v.dtype)).reshape(G * A, G)   # [G*A, G]
    wl_p = jnp.pad(wl, ((0, 0), (0, 0), (0, Kp - K)))                # [G, D, Kp]
    bl_p = jnp.pad(bl, ((0, 0), (0, 0), (0, Kp - K)),
                   constant_values=_NEG)                             # [G, 1, Kp]

    out = pl.pallas_call(
        classifier_kernel,
        out_shape=jax.ShapeDtypeStruct((G, B, Kp), jnp.float32),
        grid_spec=pltpu.PrefetchScalarGridSpec(
            num_scalar_prefetch=0,
            grid=(1,),
            in_specs=[
                pl.BlockSpec((S, B, D), lambda i: (0, 0, 0)),    # encoder (seq-first)
                pl.BlockSpec((D, G * A), lambda i: (0, 0)),      # stacked attn W
                pl.BlockSpec((1, G * A), lambda i: (0, 0)),      # stacked attn b
                pl.BlockSpec((G * A, G), lambda i: (0, 0)),      # block-diag attn v
                pl.BlockSpec((G, D, Kp), lambda i: (0, 0, 0)),   # stacked linear W (padded)
                pl.BlockSpec((G, 1, Kp), lambda i: (0, 0, 0)),   # stacked linear b (padded)
            ],
            out_specs=pl.BlockSpec((G, B, Kp), lambda i: (0, 0, 0)),
        ),
        compiler_params=pltpu.CompilerParams(
            dimension_semantics=("arbitrary",)),
    )(encoder_outputs, wa_s, ba_s, v_bd, wl_p, bl_p)

    # Slice off lane padding; [G, B, K] -> [B, G, K] (tiny output, negligible).
    return jnp.transpose(out[:, :, :K], (1, 0, 2))


def reference_forward(encoder_outputs, params):
    """Pure-JAX mirror of the torch Classifier.forward semantics."""
    wa, ba, v, wl, bl = params
    G = wa.shape[0]
    outs = []
    for i in range(G):
        energy = jnp.tanh(jnp.einsum('sbd,da->sba', encoder_outputs, wa[i]) + ba[i])
        scores = jnp.einsum('sba,a->sb', energy, v[i, 0])
        attn = jax.nn.softmax(scores, axis=0)                     # [S, B]
        a = jnp.transpose(attn)[:, None, :]                       # [B, 1, S]
        temp = jnp.transpose(encoder_outputs, (1, 0, 2))          # [B, S, D]
        weighted = jnp.matmul(a, temp)                            # [B, 1, D]
        energies = jnp.matmul(weighted, wl[i]) + bl[i]            # [B, 1, K]
        outs.append(jax.nn.log_softmax(energies, axis=2))
    return jnp.concatenate(outs, axis=1)                          # [B, G, K]


if __name__ == "__main__":
    key = jax.random.PRNGKey(0)
    enc_hid_dim = 32
    S, B = 8, 2                 # src_len, batch
    D = enc_hid_dim * 2         # lin_in = 64
    A = 16                      # attention hidden dim
    G = 3                       # num_goals (len(attention_modules))
    K = 5                       # num_goal_buckets

    k1, k2, k3, k4, k5, k6 = jax.random.split(key, 6)
    encoder_outputs = jax.random.normal(k1, (S, B, D), jnp.float32)
    wa = 0.1 * jax.random.normal(k2, (G, D, A), jnp.float32)
    ba = 0.1 * jax.random.normal(k3, (G, 1, A), jnp.float32)
    v = 0.1 * jax.random.normal(k4, (G, 1, A), jnp.float32)
    wl = 0.1 * jax.random.normal(k5, (G, D, K), jnp.float32)
    bl = 0.1 * jax.random.normal(k6, (G, 1, K), jnp.float32)
    params = (wa, ba, v, wl, bl)

    out = jax.block_until_ready(classifier_forward(encoder_outputs, params))
    ref = reference_forward(encoder_outputs, params)

    assert out.shape == (B, G, K), out.shape
    assert jnp.allclose(out, ref, rtol=1e-4, atol=1e-4), (
        float(jnp.max(jnp.abs(out - ref))))
    print("KERNEL_OK")
</pallas_src>

<mosaic_0001>
module attributes {stable_mosaic.version = 11 : i64} {
  func.func @classifier_kernel(%arg0: i32, %arg1: memref<8x2x64xf32, #tpu.memory_space<vmem>>, %arg2: memref<64x48xf32, #tpu.memory_space<vmem>>, %arg3: memref<1x48xf32, #tpu.memory_space<vmem>>, %arg4: memref<48x3xf32, #tpu.memory_space<vmem>>, %arg5: memref<3x64x128xf32, #tpu.memory_space<vmem>>, %arg6: memref<3x1x128xf32, #tpu.memory_space<vmem>>, %arg7: memref<3x2x128xf32, #tpu.memory_space<vmem>>) attributes {dimension_semantics = [#tpu.dimension_semantics<arbitrary>], iteration_bounds = array<i64: 1>, scalar_prefetch = 0 : i64, scratch_operands = 0 : i64, tpu.core_type = #tpu.core_type<tc>, window_params = [{pipeline_mode = #tpu.pipeline_mode<synchronous>, transform_indices = @transform_0, window_bounds = array<i64: 8, 2, 64>}, {pipeline_mode = #tpu.pipeline_mode<synchronous>, transform_indices = @transform_1, window_bounds = array<i64: 64, 48>}, {pipeline_mode = #tpu.pipeline_mode<synchronous>, transform_indices = @transform_2, window_bounds = array<i64: 1, 48>}, {pipeline_mode = #tpu.pipeline_mode<synchronous>, transform_indices = @transform_3, window_bounds = array<i64: 48, 3>}, {pipeline_mode = #tpu.pipeline_mode<synchronous>, transform_indices = @transform_4, window_bounds = array<i64: 3, 64, 128>}, {pipeline_mode = #tpu.pipeline_mode<synchronous>, transform_indices = @transform_5, window_bounds = array<i64: 3, 1, 128>}, {pipeline_mode = #tpu.pipeline_mode<synchronous>, transform_indices = @transform_6, window_bounds = array<i64: 3, 2, 128>}]} {
    %c0 = arith.constant 0 : index
    %c0_0 = arith.constant 0 : index
    %c0_1 = arith.constant 0 : index
    %0 = vector.load %arg1[%c0, %c0_0, %c0_1] : memref<8x2x64xf32, #tpu.memory_space<vmem>>, vector<8x2x64xf32>
    %1 = tpu.transpose %0, [1, 0, 2] : vector<8x2x64xf32> -> vector<2x8x64xf32>
    %2 = vector.shape_cast %1 : vector<2x8x64xf32> to vector<16x64xf32>
    %c0_2 = arith.constant 0 : index
    %c0_3 = arith.constant 0 : index
    %3 = vector.load %arg2[%c0_2, %c0_3] : memref<64x48xf32, #tpu.memory_space<vmem>>, vector<64x48xf32>
    %cst = arith.constant dense<0.000000e+00> : vector<16x48xf32>
    %4 = tpu.matmul %2, %3, %cst {dimension_numbers = #tpu.dot_dimension_numbers<[1], [0], [0], [1], [0, 0, 1, 1], [], []>} : vector<16x64xf32>, vector<64x48xf32>, vector<16x48xf32> -> vector<16x48xf32>
    %c0_4 = arith.constant 0 : index
    %c0_5 = arith.constant 0 : index
    %5 = vector.load %arg3[%c0_4, %c0_5] : memref<1x48xf32, #tpu.memory_space<vmem>>, vector<1x48xf32>
    %6 = vector.broadcast %5 : vector<1x48xf32> to vector<16x48xf32>
    %7 = arith.addf %4, %6 : vector<16x48xf32>
    %8 = math.tanh %7 : vector<16x48xf32>
    %c0_6 = arith.constant 0 : index
    %c0_7 = arith.constant 0 : index
    %9 = vector.load %arg4[%c0_6, %c0_7] : memref<48x3xf32, #tpu.memory_space<vmem>>, vector<48x3xf32>
    %cst_8 = arith.constant dense<0.000000e+00> : vector<16x3xf32>
    %10 = tpu.matmul %8, %9, %cst_8 {dimension_numbers = #tpu.dot_dimension_numbers<[1], [0], [0], [1], [0, 0, 1, 1], [], []>} : vector<16x48xf32>, vector<48x3xf32>, vector<16x3xf32> -> vector<16x3xf32>
    %11 = vector.shape_cast %10 : vector<16x3xf32> to vector<2x8x3xf32>
    %cst_9 = arith.constant dense<0xFF800000> : vector<2x3xf32>
    %12 = vector.multi_reduction <maximumf>, %11, %cst_9 [1] : vector<2x8x3xf32> to vector<2x3xf32>
    %13 = vector.shape_cast %12 : vector<2x3xf32> to vector<2x1x3xf32>
    %14 = vector.broadcast %13 : vector<2x1x3xf32> to vector<2x8x3xf32>
    %15 = arith.subf %11, %14 : vector<2x8x3xf32>
    %16 = math.exp %15 : vector<2x8x3xf32>
    %cst_10 = arith.constant dense<0.000000e+00> : vector<2x3xf32>
    %17 = vector.multi_reduction <add>, %16, %cst_10 [1] : vector<2x8x3xf32> to vector<2x3xf32>
    %18 = vector.shape_cast %17 : vector<2x3xf32> to vector<2x1x3xf32>
    %19 = vector.broadcast %18 : vector<2x1x3xf32> to vector<2x8x3xf32>
    %20 = arith.divf %16, %19 : vector<2x8x3xf32>
    %21 = tpu.transpose %20, [0, 2, 1] : vector<2x8x3xf32> -> vector<2x3x8xf32>
    "tpu.trace_start"() <{level = 10 : i32, message = "bgs,bsd->bgd"}> : () -> ()
    %cst_11 = arith.constant dense<0.000000e+00> : vector<2x3x64xf32>
    %22 = tpu.matmul %21, %1, %cst_11 {dimension_numbers = #tpu.dot_dimension_numbers<[2], [1], [1], [2], [0, 0, 0, 1, 1, 2], [0], [0]>} : vector<2x3x8xf32>, vector<2x8x64xf32>, vector<2x3x64xf32> -> vector<2x3x64xf32>
    "tpu.trace_stop"() : () -> ()
    %23 = tpu.transpose %22, [1, 0, 2] : vector<2x3x64xf32> -> vector<3x2x64xf32>
    %c0_12 = arith.constant 0 : index
    %c0_13 = arith.constant 0 : index
    %c0_14 = arith.constant 0 : index
    %24 = vector.load %arg5[%c0_12, %c0_13, %c0_14] : memref<3x64x128xf32, #tpu.memory_space<vmem>>, vector<3x64x128xf32>
    "tpu.trace_start"() <{level = 10 : i32, message = "gbd,gdk->gbk"}> : () -> ()
    %cst_15 = arith.constant dense<0.000000e+00> : vector<3x2x128xf32>
    %25 = tpu.matmul %23, %24, %cst_15 {dimension_numbers = #tpu.dot_dimension_numbers<[2], [1], [1], [2], [0, 0, 0, 1, 1, 2], [0], [0]>} : vector<3x2x64xf32>, vector<3x64x128xf32>, vector<3x2x128xf32> -> vector<3x2x128xf32>
    "tpu.trace_stop"() : () -> ()
    %c0_16 = arith.constant 0 : index
    %c0_17 = arith.constant 0 : index
    %c0_18 = arith.constant 0 : index
    %26 = vector.load %arg6[%c0_16, %c0_17, %c0_18] : memref<3x1x128xf32, #tpu.memory_space<vmem>>, vector<3x1x128xf32>
    %27 = vector.broadcast %26 : vector<3x1x128xf32> to vector<3x2x128xf32>
    %28 = arith.addf %25, %27 : vector<3x2x128xf32>
    %cst_19 = arith.constant dense<0xFF800000> : vector<3x2xf32>
    %29 = vector.multi_reduction <maximumf>, %28, %cst_19 [2] : vector<3x2x128xf32> to vector<3x2xf32>
    %30 = vector.shape_cast %29 : vector<3x2xf32> to vector<3x2x1xf32>
    %31 = vector.broadcast %30 : vector<3x2x1xf32> to vector<3x2x128xf32>
    %32 = arith.subf %28, %31 : vector<3x2x128xf32>
    %33 = math.exp %32 : vector<3x2x128xf32>
    %cst_20 = arith.constant dense<0.000000e+00> : vector<3x2xf32>
    %34 = vector.multi_reduction <add>, %33, %cst_20 [2] : vector<3x2x128xf32> to vector<3x2xf32>
    %35 = vector.shape_cast %34 : vector<3x2xf32> to vector<3x2x1xf32>
    %36 = math.log %35 : vector<3x2x1xf32>
    %37 = arith.addf %30, %36 : vector<3x2x1xf32>
    %38 = vector.broadcast %37 : vector<3x2x1xf32> to vector<3x2x128xf32>
    %39 = arith.subf %28, %38 : vector<3x2x128xf32>
    %c0_21 = arith.constant 0 : index
    %c0_22 = arith.constant 0 : index
    %c0_23 = arith.constant 0 : index
    %40 = vector.load %arg7[%c0_21, %c0_22, %c0_23] : memref<3x2x128xf32, #tpu.memory_space<vmem>>, vector<3x2x128xf32>
    tpu.vector_store %arg7[%c0_21, %c0_22, %c0_23], %39 {strides = array<i32>} : memref<3x2x128xf32, #tpu.memory_space<vmem>>, vector<3x2x128xf32>,
    return
  }
  func.func @transform_0(%arg0: i32) -> (i32, i32, i32) {
    %c0_i32 = arith.constant 0 : i32
    %c0_i32_0 = arith.constant 0 : i32
    %c0_i32_1 = arith.constant 0 : i32
    %c0_i32_2 = arith.constant 0 : i32
    return %c0_i32, %c0_i32_0, %c0_i32_1 : i32, i32, i32
  }
  func.func @transform_1(%arg0: i32) -> (i32, i32) {
    %c0_i32 = arith.constant 0 : i32
    %c0_i32_0 = arith.constant 0 : i32
    %c0_i32_1 = arith.constant 0 : i32
    return %c0_i32, %c0_i32_0 : i32, i32
  }
  func.func @transform_2(%arg0: i32) -> (i32, i32) {
    %c0_i32 = arith.constant 0 : i32
    %c0_i32_0 = arith.constant 0 : i32
    %c0_i32_1 = arith.constant 0 : i32
    return %c0_i32, %c0_i32_0 : i32, i32
  }
  func.func @transform_3(%arg0: i32) -> (i32, i32) {
    %c0_i32 = arith.constant 0 : i32
    %c0_i32_0 = arith.constant 0 : i32
    %c0_i32_1 = arith.constant 0 : i32
    return %c0_i32, %c0_i32_0 : i32, i32
  }
  func.func @transform_4(%arg0: i32) -> (i32, i32, i32) {
    %c0_i32 = arith.constant 0 : i32
    %c0_i32_0 = arith.constant 0 : i32
    %c0_i32_1 = arith.constant 0 : i32
    %c0_i32_2 = arith.constant 0 : i32
    return %c0_i32, %c0_i32_0, %c0_i32_1 : i32, i32, i32
  }
  func.func @transform_5(%arg0: i32) -> (i32, i32, i32) {
    %c0_i32 = arith.constant 0 : i32
    %c0_i32_0 = arith.constant 0 : i32
    %c0_i32_1 = arith.constant 0 : i32
    %c0_i32_2 = arith.constant 0 : i32
    return %c0_i32, %c0_i32_0, %c0_i32_1 : i32, i32, i32
  }
  func.func @transform_6(%arg0: i32) -> (i32, i32, i32) {
    %c0_i32 = arith.constant 0 : i32
    %c0_i32_0 = arith.constant 0 : i32
    %c0_i32_1 = arith.constant 0 : i32
    %c0_i32_2 = arith.constant 0 : i32
    return %c0_i32, %c0_i32_0, %c0_i32_1 : i32, i32, i32
  }
}

</mosaic_0001>

<bundles_post_ra>
// kernel: tpu_custom_call.1
= control target key start
LH: loop header
LB: loop body
LE: loop exit
PB: predicated region body
PF: predicated region fallthrough
CT: control target
= control target key end

     0   :  { %11 = vsyncpa [#allocation3], 0  ;;  %s799_s0 = inlined_call_operand.vmem [shape: f32[8,2,64], index: 0, kind: input, shape index: {}]   ;;  %s800_s1 = inlined_call_operand.vmem [shape: f32[64,48], index: 1, kind: input, shape index: {}]   ;;  %s801_s2 = inlined_call_operand.vmem [shape: f32[1,48], index: 2, kind: input, shape index: {}]   ;;  %s802_s3 = inlined_call_operand.vmem [shape: f32[48,3], index: 3, kind: input, shape index: {}]   ;;  %s803_s4 = inlined_call_operand.hbm [shape: f32[3,64,128], index: 4, kind: input, shape index: {}]   ;;  %s804_s5 = inlined_call_operand.vmem [shape: f32[3,1,128], index: 5, kind: input, shape index: {}]   ;;  %s805_s6 = inlined_call_operand.hbm [shape: f32[3,2,128], index: 6, kind: output, shape index: {}]  }
   0x1   :  { %12 = vsyncpa [#allocation4], 0  ;;  %s25_s23 = sshll.u32 %s803_s4, 4  ;;  %s632_s24 = smov [#allocation2]   ;;  %s26_s23 = int_to_ptr.hbm [resolvable:$true] %s25_s23 }
   0x2   :  { %s27_s25 = sshll.u32 %s632_s24, 4  ;;  %s633_s26 = smov 128   ;;  %s28_s25 = int_to_ptr.vmem [resolvable:$true] %s27_s25 }
   0x3   :  { %s634_s27 = smov 8  }
   0x4   :  { %33 = dma.hbm_to_vmem [thread:$0]  %s26_s23, 3072, %s28_s25, [#allocation3], %s633_s26, %s633_s26, %s634_s27  }
   0x5   :  { %628 = dma.done.wait [#allocation3], 3072  }
   0x6   :  { %629 = vsyncadd [#allocation3], 4294964224  ;;  %v96_v0 = vld [vmem:[%s800_s1 + $0x38] sm:$0xff]  ;;  %v95_v1 = vld [vmem:[%s800_s1 + $0x30] sm:$0xff]  ;;  %vm49_vm0 = vcmask 1047556   ;;  %vm101_vm1 = vcmask 523264  }
   0x7   :  { %116 = vmatpush.msra.mxu0 %v96_v0  ;;  %v635_v2 = vmov 1983009808   ;;  %v94_v4 = vld [vmem:[%s800_s1 + $0x28] sm:$0xff]  ;;  %v93_v5 = vld [vmem:[%s800_s1 + $0x20] sm:$0xff]  ;;  %v92_v19 = vld [vmem:[%s800_s1 + $0x18] sm:$0xff]  ;;  %vm139_vm2 = vcmask 392192  }
   0x8   :  { %v52_v3 = vunpack.c.l.s4 %v635_v2  ;;  %v40_v6 = vld [vmem:[%s799_s0] sm:$0x3]  ;;  %v41_v7 = vld [vmem:[%s799_s0 + $0x2] sm:$0x3]  ;;  %v42_v8 = vld [vmem:[%s799_s0 + $0x4] sm:$0x3] }
   0x9   :  { %117 = vmatpush.msra.mxu0 %v95_v1  ;;  %v43_v9 = vld [vmem:[%s799_s0 + $0x6] sm:$0x3]  ;;  %v44_v10 = vld [vmem:[%s799_s0 + $0x8] sm:$0x3]  ;;  %v45_v11 = vld [vmem:[%s799_s0 + $0xa] sm:$0x3] }
   0xa   :  { %v46_v12 = vld [vmem:[%s799_s0 + $0xc] sm:$0x3]  ;;  %v47_v13 = vld [vmem:[%s799_s0 + $0xe] sm:$0x3]  ;;  %v48_v14 = vrot.slane %v42_v8, 4  ;;  %v714_v15 = vunpack.c.0.s8 %v52_v3  ;;  %v55_v16 = vrot.slane %v43_v9, 4 }
   0xb   :  { %118 = vmatpush.msra.mxu0 %v94_v4  ;;  %v61_v17 = vrot.slane %v46_v12, 4  ;;  %v138_v18 = vld [vmem:[%s802_s3 + $0x28] sm:$0xff]  ;;  %v67_v20 = vrot.slane %v47_v13, 4  ;;  %v636_v21 = vmov 1934713408   ;;  %v91_v26 = vld [vmem:[%s800_s1 + $0x10] sm:$0xff] }
   0xc   :  { %v76_v22 = vunpack.c.l.s4 %v636_v21  ;;  %156 = vmatpush.msra.mxu1 %v138_v18  ;;  %v50_v23 = vsel %vm49_vm0, %v48_v14, %v40_v6  ;;  %v56_v24 = vsel %vm49_vm0, %v55_v16, %v41_v7  ;;  %v90_v32 = vld [vmem:[%s800_s1 + $0x8] sm:$0xff]  ;;  %v89_v36 = vld [vmem:[%s800_s1] sm:$0xff]  ;;  %v136_v46 = vld [vmem:[%s802_s3 + $0x18] sm:$0xff]  ;;  %vm169_vm3 = vcmask 23552   ;;  %s521_s29 = sshll.u32 %s805_s6, 4  ;;  %s638_s30 = smov 32   ;;  %s522_s29 = int_to_ptr.hbm [resolvable:$true] %s521_s29 }
   0xd   :  { %119 = vmatpush.msra.mxu0 %v93_v5  ;;  %v62_v25 = vsel %vm49_vm0, %v61_v17, %v44_v10  ;;  %v54_v27 = vperm.slane %v50_v23, %v714_v15  ;;  %v60_v28 = vperm.slane %v56_v24, %v714_v15  ;;  %v68_v29 = vsel %vm49_vm0, %v67_v20, %v45_v11  ;;  %v137_v45 = vld [vmem:[%s802_s3 + $0x20] sm:$0xff]  ;;  %v135_v47 = vld [vmem:[%s802_s3 + $0x10] sm:$0xff]  ;;  %v134_v48 = vld [vmem:[%s802_s3 + $0x8] sm:$0xff]  ;;  %s639_s0 = smov 2  }
   0xe   :  { %v66_v30 = vperm.slane %v62_v25, %v714_v15  ;;  %v72_v31 = vperm.slane %v68_v29, %v714_v15  ;;  %v736_v34 = vunpack.c.0.s8 %v76_v22  ;;  %157 = vmatpush.msra.mxu1 %v137_v45  ;;  %v133_v49 = vld [vmem:[%s802_s3] sm:$0xff]  ;;  %vm298_vm12 = vcmask 64512  }
   0xf   :  { %120 = vmatpush.msra.mxu0 %v92_v19  ;;  %v73_v33 = vrot.slane %v60_v28, 4  ;;  %v552_v50 = vld [vmem:[%s801_s2] ss:$0 sm:$0xff]  ;;  %vm472_vm13 = vcmask 1041408  }
  0x10   :  { %v79_v35 = vrot.slane %v72_v31, 4  ;;  %158 = vmatpush.msra.mxu1 %v136_v46 }
  0x11   :  { %121 = vmatpush.msra.mxu0 %v91_v26  ;;  %v74_v37 = vsel %vm49_vm0, %v73_v33, %v54_v27 }
  0x12   :  { %v78_v38 = vperm.slane %v74_v37, %v736_v34  ;;  %v80_v39 = vsel %vm49_vm0, %v79_v35, %v66_v30  ;;  %159 = vmatpush.msra.mxu1 %v135_v47 }
  0x13   :  { %122 = vmatpush.msra.mxu0 %v90_v32  ;;  %v84_v40 = vperm.slane %v80_v39, %v736_v34 }
  0x14   :  { %v87_v41 = vrot.slane %v78_v38, 4  ;;  %160 = vmatpush.msra.mxu1 %v134_v48 }
  0x15   :  { %123 = vmatpush.msra.mxu0 %v89_v36  ;;  %v85_v42 = vrot.slane %v84_v40, 4 }
  0x16   :  { %v88_v43 = vsel %vm49_vm0, %v84_v40, %v87_v41  ;;  %161 = vmatpush.msra.mxu1 %v133_v49 }
  0x17   :  { %v86_v44 = vsel %vm49_vm0, %v85_v42, %v78_v38  ;;  %340 = vmatpush.msra.mxu3 %v88_v43 }
  0x18   :  { %534 = vmatmul.msk.f32.vlgmr.msra.gmra.mxu0 %vm101_vm1, %v86_v44  ;;  %317 = vmatpush.msra.mxu2 %v86_v44 }
  0x20   :  { %535 = vmatmul.msk.f32.gmra.mxu0 %vm101_vm1, %v88_v43 }
  0x95   :  { %v125_v51 = vpop.f32.mrf.mxu0 }
  0x96   :  { %v126_v52 = vadd.f32 %v552_v50, %v125_v51 }
  0x98   :  { %556 = vtanh.f32 %v126_v52 }
  0x9d   :  { %v128_v53 = vpop.f32.mrf.mxu0 }
  0x9e   :  { %v557_v54 = vpop.eup %556  ;;  %v129_v55 = vadd.f32 %v552_v50, %v128_v53  ;;  %v374_v53 = vld [vmem:[#allocation2 + $0x38] sm:$0xff] }
  0x9f   :  { %536 = vmatmul.msk.f32.vlgmr.msra.gmra.mxu1 %vm139_vm2, %v557_v54  ;;  %414 = vmatpush.msrb.mxu2 %v374_v53 }
  0xa0   :  { %558 = vtanh.f32 %v129_v55 }
  0xa6   :  { %v559_v56 = vpop.eup %558 }
  0xa7   :  { %537 = vmatmul.msk.f32.gmra.mxu1 %vm139_vm2, %v559_v56  ;;  %v373_v56 = vld [vmem:[#allocation2 + $0x30] sm:$0xff] }
  0xa8   :  { %415 = vmatpush.msrb.mxu2 %v373_v56 }
 0x11c   :  { %v163_v57 = vpop.f32.mrf.mxu1 }
 0x11d   :  { %v170_v58 = vsel %vm169_vm3, %v163_v57, -inf }
 0x11e   :  { %v171_v59 = vrot.slane %v170_v58, 4 }
 0x120   :  { %v172_v60 = vmax.f32 %v170_v58, %v171_v59  ;;  %v382_v58 = vld [vmem:[#allocation2 + $0x78] sm:$0xff]  ;;  %v372_v59 = vld [vmem:[#allocation2 + $0x28] sm:$0xff] }
 0x121   :  { %437 = vmatpush.msrb.mxu3 %v382_v58  ;;  %416 = vmatpush.msrb.mxu2 %v372_v59 }
 0x122   :  { %v173_v61 = vrot.slane %v172_v60, 2 }
 0x124   :  { %v174_v62 = vmax.f32 %v172_v60, %v173_v61  ;;  %v166_v63 = vpop.f32.mrf.mxu1  ;;  %v389_v60 = vld [vmem:[#allocation2 + $0xb0] sm:$0xff] }
 0x125   :  { %v177_v0 = vsel %vm169_vm3, %v166_v63, -inf  ;;  %v381_v61 = vld [vmem:[#allocation2 + $0x70] sm:$0xff] }
 0x126   :  { %v175_v1 = vrot.slane %v174_v62, 1  ;;  %v178_v2 = vrot.slane %v177_v0, 4  ;;  %438 = vmatpush.msrb.mxu3 %v381_v61 }
 0x128   :  { %v176_v3 = vmax.f32 %v174_v62, %v175_v1  ;;  %v179_v4 = vmax.f32 %v177_v0, %v178_v2  ;;  %v371_v62 = vld [vmem:[#allocation2 + $0x20] sm:$0xff]  ;;  %v380_v0 = vld [vmem:[#allocation2 + $0x68] sm:$0xff]  ;;  %v370_v1 = vld [vmem:[#allocation2 + $0x18] sm:$0xff] }
 0x129   :  { %v387_v2 = vld [vmem:[#allocation2 + $0xa0] sm:$0xff]  ;;  %417 = vmatpush.msrb.mxu2 %v371_v62  ;;  %439 = vmatpush.msrb.mxu3 %v380_v0 }
 0x12a   :  { %v184_v5 = vsub.f32 %v163_v57, %v176_v3  ;;  %v180_v6 = vrot.slane %v179_v4, 2  ;;  %v390_v57 = vld [vmem:[#allocation2 + $0xb8] sm:$0xff]  ;;  %v379_v3 = vld [vmem:[#allocation2 + $0x60] sm:$0xff] }
 0x12b   :  { %460 = vmatpush.msrb.mxu1 %v390_v57  ;;  %418 = vmatpush.msrb.mxu2 %v370_v1 }
 0x12c   :  { %v186_v7 = vmul.f32 1.442695, %v184_v5  ;;  %v181_v8 = vmax.f32 %v179_v4, %v180_v6  ;;  %440 = vmatpush.msrb.mxu3 %v379_v3  ;;  %v369_v4 = vld [vmem:[#allocation2 + $0x10] sm:$0xff]  ;;  %v386_v5 = vld [vmem:[#allocation2 + $0x98] sm:$0xff] }
 0x12d   :  { %461 = vmatpush.msrb.mxu1 %v389_v60  ;;  %419 = vmatpush.msrb.mxu2 %v369_v4  ;;  %v378_v6 = vld [vmem:[#allocation2 + $0x58] sm:$0xff] }
 0x12e   :  { %560 = vpow2.f32 %v186_v7  ;;  %v182_v9 = vrot.slane %v181_v8, 1  ;;  %441 = vmatpush.msrb.mxu3 %v378_v6  ;;  %v368_v7 = vld [vmem:[#allocation2 + $0x8] sm:$0xff] }
 0x12f   :  { %420 = vmatpush.msrb.mxu2 %v368_v7 }
 0x130   :  { %v183_v10 = vmax.f32 %v181_v8, %v182_v9  ;;  %v385_v8 = vld [vmem:[#allocation2 + $0x90] sm:$0xff] }
 0x131   :  { %v377_v9 = vld [vmem:[#allocation2 + $0x50] sm:$0xff] }
 0x132   :  { %v185_v11 = vsub.f32 %v166_v63, %v183_v10  ;;  %v388_v63 = vld [vmem:[#allocation2 + $0xa8] sm:$0xff]  ;;  %442 = vmatpush.msrb.mxu3 %v377_v9  ;;  %v367_v10 = vld [vmem:[#allocation2] sm:$0xff] }
 0x133   :  { %462 = vmatpush.msrb.mxu1 %v388_v63  ;;  %421 = vmatpush.msrb.mxu2 %v367_v10 }
 0x134   :  { %v561_v12 = vpop.eup %560  ;;  %v188_v13 = vmul.f32 1.442695, %v185_v11  ;;  %v384_v11 = vld [vmem:[#allocation2 + $0x88] sm:$0xff] }
 0x135   :  { %v190_v14 = vsel %vm169_vm3, %v561_v12, 0.0  ;;  %463 = vmatpush.msrb.mxu1 %v387_v2 }
 0x136   :  { %v191_v16 = vrot.slane %v190_v14, 4  ;;  %562 = vpow2.f32 %v188_v13  ;;  %v383_v13 = vld [vmem:[#allocation2 + $0x80] sm:$0xff] }
 0x137   :  { %464 = vmatpush.msrb.mxu1 %v386_v5 }
 0x138   :  { %v192_v17 = vadd.f32 %v191_v16, %v190_v14  ;;  %v375_v14 = vld [vmem:[#allocation2 + $0x40] sm:$0xff] }
 0x139   :  { %465 = vmatpush.msrb.mxu1 %v385_v8 }
 0x13a   :  { %v193_v18 = vrot.slane %v192_v17, 2 }
 0x13b   :  { %466 = vmatpush.msrb.mxu1 %v384_v11 }
 0x13c   :  { %v563_v19 = vpop.eup %562  ;;  %v194_v20 = vadd.f32 %v193_v18, %v192_v17 }
 0x13d   :  { %v197_v21 = vsel %vm169_vm3, %v563_v19, 0.0  ;;  %467 = vmatpush.msrb.mxu1 %v383_v13 }
 0x13e   :  { %v195_v22 = vrot.slane %v194_v20, 1  ;;  %v198_v23 = vrot.slane %v197_v21, 4 }
 0x140   :  { %v196_v24 = vadd.f32 %v195_v22, %v194_v20  ;;  %v199_v25 = vadd.f32 %v198_v23, %v197_v21 }
 0x142   :  { %v200_v26 = vrot.slane %v199_v25, 2  ;;  %564 = vrcp.f32 %v196_v24  ;;  %v215_v46 = vand.u32 2147483648, %v196_v24  ;;  %vm209_vm9 = vweird.f32 %v196_v24 }
 0x143   :  { %v213_v48 = vand.u32 2147483647, %v196_v24 }
 0x144   :  { %v201_v27 = vadd.f32 %v200_v26, %v199_v25  ;;  %v216_v50 = vor.u32 1.1754944e-38, %v215_v46 }
 0x145   :  { %vm214_vm11 = vcmp.eq.f32.partialorder %v213_v48, 8.507059e+37 }
 0x146   :  { %v202_v28 = vrot.slane %v201_v27, 1 }
 0x148   :  { %v203_v29 = vadd.f32 %v202_v28, %v201_v27  ;;  %v565_v30 = vpop.eup %564 }
 0x149   :  { %v205_v31 = vmul.f32 %v565_v30, %v196_v24  ;;  %vm210_vm8 = vweird.f32 %v565_v30 }
 0x14a   :  { %566 = vrcp.f32 %v203_v29  ;;  %v230_v37 = vand.u32 2147483648, %v203_v29  ;;  %v228_v39 = vand.u32 2147483647, %v203_v29  ;;  %vm224_vm5 = vweird.f32 %v203_v29  ;;  %vm211_vm10 = vmor %vm209_vm9, %vm210_vm8 }
 0x14b   :  { %v206_v35 = vsub.f32 1.0, %v205_v31 }
 0x14c   :  { %v231_v42 = vor.u32 1.1754944e-38, %v230_v37  ;;  %vm229_vm7 = vcmp.eq.f32.partialorder %v228_v39, 8.507059e+37 }
 0x14d   :  { %v207_v40 = vmul.f32 %v565_v30, %v206_v35 }
 0x14f   :  { %v208_v44 = vadd.f32 %v565_v30, %v207_v40 }
 0x150   :  { %v567_v32 = vpop.eup %566 }
 0x151   :  { %v220_v33 = vmul.f32 %v567_v32, %v203_v29  ;;  %vm225_vm4 = vweird.f32 %v567_v32  ;;  %v212_v49 = vsel %vm211_vm10, %v565_v30, %v208_v44  ;;  %v554_v30 = vld [vmem:[%s804_s5] ss:$0 sm:$0xff] }
 0x152   :  { %vm226_vm6 = vmor %vm224_vm5, %vm225_vm4  ;;  %v217_v51 = vsel %vm214_vm11, %v216_v50, %v212_v49 }
 0x153   :  { %v221_v36 = vsub.f32 1.0, %v220_v33  ;;  %v218_v52 = vmul.f32 %v561_v12, %v217_v51  ;;  %v376_v12 = vld [vmem:[#allocation2 + $0x48] sm:$0xff]  ;;  %v555_v33 = vld [vmem:[%s804_s5 + $0x1] ss:$0 sm:$0xff] }
 0x154   :  { %443 = vmatpush.msrb.mxu3 %v376_v12 }
 0x155   :  { %v222_v38 = vmul.f32 %v567_v32, %v221_v36 }
 0x156   :  { %444 = vmatpush.msrb.mxu3 %v375_v14 }
 0x157   :  { %v223_v41 = vadd.f32 %v567_v32, %v222_v38 }
 0x159   :  { %v227_v43 = vsel %vm226_vm6, %v567_v32, %v223_v41 }
 0x15a   :  { %v232_v45 = vsel %vm229_vm7, %v231_v42, %v227_v43 }
 0x15b   :  { %v233_v47 = vmul.f32 %v563_v19, %v232_v45 }
 0x15d   :  { %266 = vxpose.xlu0.b32.start.end [1/1] (short) (narrow) %v233_v47, 8 }
 0x165   :  { %234 = vxpose.xlu0.b32.start.end [1/1] (short) (narrow) %v218_v52, 8 }
 0x201   :  { %v282_v54 = vpop.trf.xlu0 }
 0x202   :  { %539 = vmatmul.msk.f32.vlgmr.msra.gmra.mxu3 %vm298_vm12, %v282_v54 }
 0x209   :  { %v250_v55 = vpop.trf.xlu0 }
 0x20a   :  { %538 = vmatmul.msk.f32.vlgmr.msra.gmra.mxu2 %vm298_vm12, %v250_v55 }
 0x285   :  { %v342_v16 = vpop.f32.mrf.mxu3 }
 0x286   :  { %v352_v17 = vperm.slane %v342_v16, %v714_v15 }
 0x288   :  { %v353_v19 = vrot.slane %v352_v17, 4 }
 0x28d   :  { %v319_v18 = vpop.f32.mrf.mxu2 }
 0x28e   :  { %v348_v20 = vperm.slane %v319_v18, %v714_v15  ;;  %v553_v15 = vld [vmem:[%s804_s5 + $0x2] ss:$0 sm:$0xff]  ;;  %s637_s5 = smov [#allocation5]  }
 0x28f   :  { %s519_s26 = sshll.u32 %s637_s5, 4  ;;  %s520_s26 = int_to_ptr.vmem [resolvable:$true] %s519_s26 }
 0x290   :  { %v354_v21 = vsel %vm49_vm0, %v353_v19, %v348_v20  ;;  %v355_v22 = vrot.slane %v348_v20, 4 }
 0x291   :  { %v360_v23 = vperm.slane %v354_v21, %v736_v34 }
 0x292   :  { %v356_v24 = vsel %vm49_vm0, %v352_v17, %v355_v22 }
 0x293   :  { %540 = vmatmul.msk.f32.vlgmr.msrb.gmra.mxu2 %vm101_vm1, %v360_v23  ;;  %v366_v25 = vperm.slane %v356_v24, %v736_v34  ;;  %v361_v26 = vrot.slane %v360_v23, 4 }
 0x295   :  { %542 = vmatmul.msk.f32.vlgmr.msrb.gmra.mxu1 %vm101_vm1, %v366_v25  ;;  %v362_v27 = vsel %vm49_vm0, 0.0, %v361_v26 }
 0x296   :  { %541 = vmatmul.msk.f32.vlgmr.msrb.gmra.mxu3 %vm101_vm1, %v362_v27 }
 0x312   :  { %v469_v28 = vpop.f32.mrf.mxu1 }
 0x313   :  { %v470_v29 = vadd.f32 %v553_v15, %v469_v28 }
 0x315   :  { %v479_v34 = vsel %vm472_vm13, %v470_v29, -inf }
 0x316   :  { %480 = vmax.xlane.f32.xlu2 %v479_v34  ;;  %v423_v31 = vpop.f32.mrf.mxu2 }
 0x317   :  { %v424_v32 = vadd.f32 %v554_v30, %v423_v31 }
 0x319   :  { %v473_v35 = vsel %vm472_vm13, %v424_v32, -inf  ;;  %v446_v36 = vpop.f32.mrf.mxu3 }
 0x31a   :  { %474 = vmax.xlane.f32.xlu1 %v473_v35  ;;  %v447_v37 = vadd.f32 %v555_v33, %v446_v36 }
 0x31c   :  { %v476_v38 = vsel %vm472_vm13, %v447_v37, -inf }
 0x322   :  { %477 = vmax.xlane.f32.xlu1 %v476_v38 }
 0x389   :  { %v481_v39 = vpop.xlane.xlu2 %480 }
 0x38a   :  { %v484_v40 = vsub.f32 %v470_v29, %v481_v39 }
 0x38c   :  { %v489_v41 = vmul.f32 1.442695, %v484_v40 }
 0x38d   :  { %v475_v42 = vpop.xlane.xlu1 %474 }
 0x38e   :  { %568 = vpow2.f32 %v489_v41  ;;  %v482_v43 = vsub.f32 %v424_v32, %v475_v42 }
 0x390   :  { %v485_v44 = vmul.f32 1.442695, %v482_v43 }
 0x392   :  { %570 = vpow2.f32 %v485_v44 }
 0x394   :  { %v569_v45 = vpop.eup %568 }
 0x395   :  { %v478_v46 = vpop.xlane.xlu1 %477  ;;  %v497_v47 = vsel %vm472_vm13, %v569_v45, 0.0 }
 0x396   :  { %v483_v48 = vsub.f32 %v447_v37, %v478_v46  ;;  %498 = vadd.xlane.f32.xlu1 %v497_v47 }
 0x398   :  { %v571_v49 = vpop.eup %570  ;;  %v487_v50 = vmul.f32 1.442695, %v483_v48 }
 0x399   :  { %v491_v51 = vsel %vm472_vm13, %v571_v49, 0.0 }
 0x39a   :  { %572 = vpow2.f32 %v487_v50  ;;  %492 = vadd.xlane.f32.xlu2 %v491_v51 }
 0x3a0   :  { %v573_v52 = vpop.eup %572 }
 0x3a1   :  { %v494_v53 = vsel %vm472_vm13, %v573_v52, 0.0 }
 0x3a2   :  { %495 = vadd.xlane.f32.xlu0 %v494_v53 }
 0x409   :  { %v499_v54 = vpop.xlane.xlu1 %498 }
 0x40a   :  { %574 = vlog2.f32 %v499_v54 }
 0x40d   :  { %v493_v55 = vpop.xlane.xlu2 %492 }
 0x40e   :  { %576 = vlog2.f32 %v493_v55 }
 0x410   :  { %v575_v56 = vpop.eup %574 }
 0x411   :  { %v505_v57 = vmul.f32 0.6931472, %v575_v56 }
 0x413   :  { %v508_v58 = vadd.f32 %v505_v57, %v481_v39 }
 0x414   :  { %v577_v59 = vpop.eup %576 }
 0x415   :  { %v511_v60 = vsub.f32 %v470_v29, %v508_v58  ;;  %v501_v61 = vmul.f32 0.6931472, %v577_v59  ;;  %v496_v62 = vpop.xlane.xlu0 %495 }
 0x416   :  { %578 = vlog2.f32 %v496_v62 }
 0x417   :  { %514 = vst [vmem:[#allocation5 + $0x4] sm:$0x3] %v511_v60  ;;  %v506_v63 = vadd.f32 %v501_v61, %v475_v42 }
 0x419   :  { %v509_v0 = vsub.f32 %v424_v32, %v506_v63 }
 0x41b   :  { %512 = vst [vmem:[#allocation5] sm:$0x3] %v509_v0 }
 0x41c   :  { %v579_v1 = vpop.eup %578 }
 0x41d   :  { %v503_v2 = vmul.f32 0.6931472, %v579_v1 }
 0x41f   :  { %v507_v3 = vadd.f32 %v503_v2, %v478_v46 }
 0x421   :  { %v510_v4 = vsub.f32 %v447_v37, %v507_v3 }
 0x423   :  { %513 = vst [vmem:[#allocation5 + $0x2] sm:$0x3] %v510_v4 }
 0x424   :  { %527 = dma.vmem_to_hbm [thread:$0]  %s520_s26, 96, %s522_s29, [#allocation4], %s638_s30, %s638_s30, %s639_s0  }
 0x425   :  { %630 = dma.done.wait [#allocation4], 96  }
 0x426   :  { %631 = vsyncadd [#allocation4], 4294967200 }
 0x427   :  { %532 = vsyncpa [#allocation3], 1 }
 0x428   :  { %533 = vsyncpa [#allocation4], 1 }

</bundles_post_ra>
